<compile_context>
chip_gen: v6e
topology: v6e:2x2x1
jax: 0.10.0
libtpu: 0.0.40
codegen_flags: <defaults>
</compile_context>

<pallas_src>
import jax
import jax.numpy as jnp
from jax.experimental import pallas as pl
from jax.experimental.pallas import tpu as pltpu


def _round_up(x, m):
    return ((x + m - 1) // m) * m


# --------------------------------------------------------------------------
# Small-table fast path: table resident in VMEM, one-hot MXU gather per tile.
# --------------------------------------------------------------------------
def _onehot_kernel(ids_ref, table_ref, out_ref):
    # ids_ref   : (T, 1) int32 VMEM block of token ids
    # table_ref : (V, D) VMEM-resident embedding table (same block every step)
    # out_ref   : (T, D) VMEM output block
    T = out_ref.shape[0]
    V = table_ref.shape[0]
    ids = ids_ref[...]                                        # (T, 1)
    vocab_iota = jax.lax.broadcasted_iota(jnp.int32, (T, V), 1)
    one_hot = (vocab_iota == ids).astype(table_ref.dtype)     # (T, V)
    out_ref[...] = jnp.dot(
        one_hot, table_ref[...], preferred_element_type=jnp.float32
    ).astype(out_ref.dtype)


def _lookup_small_table(ids_flat, table, tile_t):
    n = ids_flat.shape[0]
    V, D = table.shape
    n_pad = _round_up(n, tile_t)
    if n_pad != n:
        ids_flat = jnp.pad(ids_flat, (0, n_pad - n))   # row 0 is always valid
    num_tiles = n_pad // tile_t
    ids_2d = ids_flat.reshape(n_pad, 1)

    out_flat = pl.pallas_call(
        _onehot_kernel,
        out_shape=jax.ShapeDtypeStruct((n_pad, D), table.dtype),
        grid_spec=pltpu.PrefetchScalarGridSpec(
            num_scalar_prefetch=0,
            grid=(num_tiles,),
            in_specs=[
                pl.BlockSpec((tile_t, 1), lambda i: (i, 0)),   # ids tile
                pl.BlockSpec((V, D), lambda i: (0, 0)),        # table, resident
            ],
            out_specs=pl.BlockSpec((tile_t, D), lambda i: (i, 0)),
        ),
        compiler_params=pltpu.CompilerParams(
            dimension_semantics=("parallel",)),
    )(ids_2d, table)
    return out_flat[:n]


# --------------------------------------------------------------------------
# Large-table path: manual per-row DMA gather from HBM (O(N*D) bytes).
# --------------------------------------------------------------------------
def _make_gather_kernel(tokens_per_tile: int, n_sems: int):
    """Build a kernel that DMA-gathers `tokens_per_tile` table rows."""

    def kernel(ids_ref, table_hbm, out_ref, sems):
        # ids_ref   : (N_padded,) int32 in SMEM (scalar prefetch)
        # table_hbm : (V, D) in HBM (memory_space=pl.ANY)
        # out_ref   : (tokens_per_tile, D) VMEM output block
        # sems      : (n_sems,) DMA semaphores
        base = pl.program_id(0) * tokens_per_tile

        # Read all SMEM token ids up-front so later DMA .wait()s do not break
        # sst->sld forwarding on the scalar path.
        rows = [ids_ref[base + t] for t in range(tokens_per_tile)]

        def start(t, slot):
            pltpu.make_async_copy(
                table_hbm.at[pl.ds(rows[t], 1)],   # (1, D) row in HBM
                out_ref.at[pl.ds(t, 1)],           # (1, D) row of output block
                sems.at[slot],
            ).start()

        def wait(slot):
            # All row copies have identical size; a same-shape dummy
            # descriptor waits for whatever copy is in flight on this slot.
            pltpu.make_async_copy(
                table_hbm.at[pl.ds(0, 1)],
                out_ref.at[pl.ds(0, 1)],
                sems.at[slot],
            ).wait()

        # Issue all row gathers with at most n_sems DMAs in flight.
        for t in range(tokens_per_tile):
            slot = t % n_sems
            if t >= n_sems:
                wait(slot)          # reclaim this semaphore slot
            start(t, slot)
        # Drain remaining in-flight copies before the body ends so the
        # pipeline's output writeback sees completed data.
        for t in range(max(0, tokens_per_tile - n_sems), tokens_per_tile):
            wait(t % n_sems)

    return kernel


def _lookup_large_table(ids_flat, table, tile_t, max_inflight):
    n = ids_flat.shape[0]
    V, D = table.shape
    n_pad = _round_up(n, tile_t)
    if n_pad != n:
        ids_flat = jnp.pad(ids_flat, (0, n_pad - n))
    num_tiles = n_pad // tile_t
    n_sems = min(max_inflight, tile_t)

    kernel = _make_gather_kernel(tile_t, n_sems)

    out_flat = pl.pallas_call(
        kernel,
        out_shape=jax.ShapeDtypeStruct((n_pad, D), table.dtype),
        grid_spec=pltpu.PrefetchScalarGridSpec(
            num_scalar_prefetch=1,                         # ids -> SMEM
            grid=(num_tiles,),
            in_specs=[pl.BlockSpec(memory_space=pl.ANY)],  # table stays in HBM
            out_specs=pl.BlockSpec((tile_t, D), lambda i, ids: (i, 0)),
            scratch_shapes=[pltpu.SemaphoreType.DMA((n_sems,))],
        ),
        compiler_params=pltpu.CompilerParams(
            dimension_semantics=("arbitrary",)),
    )(ids_flat, table)
    return out_flat[:n]


# --------------------------------------------------------------------------
# Public wrapper (== EmbeddingLayer.forward)
# --------------------------------------------------------------------------
_VMEM_TABLE_LIMIT_BYTES = 4 * 1024 * 1024   # keep headroom vs v7x's 64 MiB VMEM


def embedding_lookup(ids, table, *, tokens_per_tile=256, max_inflight=8,
                     force_dma_gather=False):
    """ids: int array of any shape, table: (V, D) -> ids.shape + (D,)."""
    V, D = table.shape
    orig_shape = ids.shape
    ids_flat = jnp.asarray(ids, jnp.int32).reshape(-1)
    n = ids_flat.shape[0]

    # As many tokens per grid step as reasonable (fewer steps => less fixed
    # per-step overhead), 8-row aligned, capped to keep the output tile small.
    tile_t = min(tokens_per_tile, _round_up(n, 8))

    table_bytes = V * D * jnp.dtype(table.dtype).itemsize
    if (table_bytes <= _VMEM_TABLE_LIMIT_BYTES) and not force_dma_gather:
        out_flat = _lookup_small_table(ids_flat, table, tile_t)
    else:
        out_flat = _lookup_large_table(ids_flat, table,
                                       min(128, tile_t), max_inflight)
    return out_flat.reshape(*orig_shape, D)


if __name__ == "__main__":
    # Small shapes consistent with the module: vocab_size=128, d_embed=32.
    vocab_size = 128
    d_embed = 32
    batch, seq = 2, 8

    key = jax.random.PRNGKey(0)
    k_tbl, k_ids = jax.random.split(key)

    # nn.Embedding default init: weight ~ N(0, 1)
    table = jax.random.normal(k_tbl, (vocab_size, d_embed), dtype=jnp.float32)
    ids = jax.random.randint(k_ids, (batch, seq), 0, vocab_size, dtype=jnp.int32)

    ref = jnp.take(table, ids, axis=0)

    # Fast path (table resident in VMEM, one-hot MXU gather).
    out = embedding_lookup(ids, table)
    out = jax.block_until_ready(out)
    assert out.shape == (batch, seq, d_embed)
    assert jnp.allclose(out, ref), "mismatch vs reference gather (VMEM path)"

    # Large-table path (manual HBM row-gather DMAs), forced for coverage.
    out_dma = embedding_lookup(ids, table, force_dma_gather=True)
    out_dma = jax.block_until_ready(out_dma)
    assert jnp.allclose(out_dma, ref), "mismatch vs reference gather (DMA path)"

    print("KERNEL_OK")
</pallas_src>

<mosaic_0001>
module attributes {stable_mosaic.version = 11 : i64} {
  func.func @_onehot_kernel(%arg0: i32, %arg1: memref<16x1xi32, #tpu.memory_space<vmem>>, %arg2: memref<128x32xf32, #tpu.memory_space<vmem>>, %arg3: memref<16x32xf32, #tpu.memory_space<vmem>>) attributes {dimension_semantics = [#tpu.dimension_semantics<parallel>], iteration_bounds = array<i64: 1>, scalar_prefetch = 0 : i64, scratch_operands = 0 : i64, tpu.core_type = #tpu.core_type<tc>, window_params = [{transform_indices = @transform_0, window_bounds = array<i64: 16, 1>}, {pipeline_mode = #tpu.pipeline_mode<synchronous>, transform_indices = @transform_1, window_bounds = array<i64: 128, 32>}, {transform_indices = @transform_2, window_bounds = array<i64: 16, 32>}]} {
    %c0 = arith.constant 0 : index
    %c0_0 = arith.constant 0 : index
    %0 = vector.load %arg1[%c0, %c0_0] : memref<16x1xi32, #tpu.memory_space<vmem>>, vector<16x1xi32>
    %1 = tpu.iota {dimensions = array<i32: 1>} : vector<16x128xi32>
    %2 = vector.broadcast %0 : vector<16x1xi32> to vector<16x128xi32>
    %3 = arith.cmpi eq, %1, %2 : vector<16x128xi32>
    %4 = arith.extui %3 : vector<16x128xi1> to vector<16x128xi32>
    %5 = arith.sitofp %4 : vector<16x128xi32> to vector<16x128xf32>
    %c0_1 = arith.constant 0 : index
    %c0_2 = arith.constant 0 : index
    %6 = vector.load %arg2[%c0_1, %c0_2] : memref<128x32xf32, #tpu.memory_space<vmem>>, vector<128x32xf32>
    %cst = arith.constant dense<0.000000e+00> : vector<16x32xf32>
    %7 = tpu.matmul %5, %6, %cst {dimension_numbers = #tpu.dot_dimension_numbers<[1], [0], [0], [1], [0, 0, 1, 1], [], []>} : vector<16x128xf32>, vector<128x32xf32>, vector<16x32xf32> -> vector<16x32xf32>
    %c0_3 = arith.constant 0 : index
    %c0_4 = arith.constant 0 : index
    %8 = vector.load %arg3[%c0_3, %c0_4] : memref<16x32xf32, #tpu.memory_space<vmem>>, vector<16x32xf32>
    tpu.vector_store %arg3[%c0_3, %c0_4], %7 {strides = array<i32>} : memref<16x32xf32, #tpu.memory_space<vmem>>, vector<16x32xf32>,
    return
  }
  func.func @transform_0(%arg0: i32) -> (i32, i32) {
    %c0_i32 = arith.constant 0 : i32
    %c0_i32_0 = arith.constant 0 : i32
    return %arg0, %c0_i32 : i32, i32
  }
  func.func @transform_1(%arg0: i32) -> (i32, i32) {
    %c0_i32 = arith.constant 0 : i32
    %c0_i32_0 = arith.constant 0 : i32
    %c0_i32_1 = arith.constant 0 : i32
    return %c0_i32, %c0_i32_0 : i32, i32
  }
  func.func @transform_2(%arg0: i32) -> (i32, i32) {
    %c0_i32 = arith.constant 0 : i32
    %c0_i32_0 = arith.constant 0 : i32
    return %arg0, %c0_i32 : i32, i32
  }
}

</mosaic_0001>

<bundles_post_ra>
// kernel: tpu_custom_call.1
= control target key start
LH: loop header
LB: loop body
LE: loop exit
PB: predicated region body
PF: predicated region fallthrough
CT: control target
= control target key end

     0   :  { %v223_v2 = vmov 0   ;;  %s300_s0 = inlined_call_operand.vmem [shape: s32[16,1], index: 0, kind: input, shape index: {}]   ;;  %s301_s1 = inlined_call_operand.vmem [shape: f32[128,32], index: 1, kind: input, shape index: {}]   ;;  %s302_s2 = inlined_call_operand.hbm [shape: f32[16,32], index: 2, kind: output, shape index: {}]  }
   0x1   :  { %v12_v0 = vld [vmem:[%s300_s0] sm:$0xff]  ;;  %v43_v1 = vld [vmem:[%s301_s1 + $0x78] sm:$0xff]  ;;  %200 = vset.pattern.permute.xlu0 %v223_v2  ;;  %v42_v3 = vld [vmem:[%s301_s1 + $0x70] sm:$0xff] }
   0x2   :  { %160 = vmatprep.subr.mxu0 %v43_v1  ;;  %17 = vperm.xlu0 %200, %v12_v0   ;;  %v41_v4 = vld [vmem:[%s301_s1 + $0x68] sm:$0xff]  ;;  %v40_v6 = vld [vmem:[%s301_s1 + $0x60] sm:$0xff]  ;;  %v39_v7 = vld [vmem:[%s301_s1 + $0x58] sm:$0xff] }
   0x3   :  { %161 = vmatpush3.msra.mxu0 %v43_v1  ;;  %v13_v5 = vld [vmem:[%s300_s0 + $0x8] sm:$0xff] }
   0x4   :  { %162 = vmatprep.subr.mxu0 %v42_v3 }
   0x5   :  { %163 = vmatpush3.msra.mxu0 %v42_v3 }
   0x6   :  { %164 = vmatprep.subr.mxu0 %v41_v4  ;;  %20 = vperm.xlu0 %200, %v13_v5  }
   0x7   :  { %165 = vmatpush3.msra.mxu0 %v41_v4 }
   0x8   :  { %7 = vsyncpa [#allocation3], 0  ;;  %166 = vmatprep.subr.mxu0 %v40_v6  ;;  %v38_v8 = vld [vmem:[%s301_s1 + $0x50] sm:$0xff]  ;;  %v37_v9 = vld [vmem:[%s301_s1 + $0x48] sm:$0xff]  ;;  %v14_v19 = vlaneseq  ;;  %v224_v22 = vmov 1.0   ;;  %s225_s16 = smov [#allocation2]  }
   0x9   :  { %167 = vmatpush3.msra.mxu0 %v40_v6  ;;  %v36_v10 = vld [vmem:[%s301_s1 + $0x40] sm:$0xff]  ;;  %v35_v11 = vld [vmem:[%s301_s1 + $0x38] sm:$0xff]  ;;  %v34_v12 = vld [vmem:[%s301_s1 + $0x30] sm:$0xff]  ;;  %s127_s17 = sshll.u32 %s225_s16, 4  ;;  %vm119_vm2 = vcmask 261120   ;;  %s128_s17 = int_to_ptr.vmem [resolvable:$true] %s127_s17 }
   0xa   :  { %168 = vmatprep.subr.mxu0 %v39_v7  ;;  %v33_v13 = vld [vmem:[%s301_s1 + $0x28] sm:$0xff]  ;;  %v32_v14 = vld [vmem:[%s301_s1 + $0x20] sm:$0xff]  ;;  %v31_v15 = vld [vmem:[%s301_s1 + $0x18] sm:$0xff]  ;;  %v15_v20 = vand.u32 127, %v14_v19  ;;  %p206_p1 = scmp.lt.s32.totalorder %s128_s17, %s128_s17 }
   0xb   :  { %169 = vmatpush3.msra.mxu0 %v39_v7  ;;  %v30_v16 = vld [vmem:[%s301_s1 + $0x10] sm:$0xff]  ;;  %v29_v17 = vld [vmem:[%s301_s1 + $0x8] sm:$0xff]  ;;  %v28_v18 = vld [vmem:[%s301_s1] sm:$0xff]  ;;  %s201_s1 = scalar_lea.vmem %s128_s17, 256 }
   0xc   :  { %170 = vmatprep.subr.mxu0 %v38_v8  ;;  %p202_p0 = scmp.ne.s32.totalorder %s128_s17, %s201_s1  ;;  %p207_p2 = scmp.lt.s32.totalorder %s201_s1, %s201_s1 }
   0xd   :  { %171 = vmatpush3.msra.mxu0 %v38_v8 }
   0xe   :  { %172 = vmatprep.subr.mxu0 %v37_v9  ;;  %p208_p3 = por %p207_p2, %p206_p1 }
   0xf   :  { %173 = vmatpush3.msra.mxu0 %v37_v9 }
  0x10   :  { %174 = vmatprep.subr.mxu0 %v36_v10  ;;  %p209_p4 = pnand %p208_p3, %p202_p0 }
  0x11   :  { %175 = vmatpush3.msra.mxu0 %v36_v10 }
  0x12   :  { %176 = vmatprep.subr.mxu0 %v35_v11 }
  0x13   :  { %177 = vmatpush3.msra.mxu0 %v35_v11 }
  0x14   :  { %178 = vmatprep.subr.mxu0 %v34_v12 }
  0x15   :  { %179 = vmatpush3.msra.mxu0 %v34_v12 }
  0x16   :  { %180 = vmatprep.subr.mxu0 %v33_v13 }
  0x17   :  { %181 = vmatpush3.msra.mxu0 %v33_v13 }
  0x18   :  { %182 = vmatprep.subr.mxu0 %v32_v14 }
  0x19   :  { %183 = vmatpush3.msra.mxu0 %v32_v14 }
  0x1a   :  { %184 = vmatprep.subr.mxu0 %v31_v15 }
  0x1b   :  { %185 = vmatpush3.msra.mxu0 %v31_v15 }
  0x1c   :  { %186 = vmatprep.subr.mxu0 %v30_v16 }
  0x1d   :  { %187 = vmatpush3.msra.mxu0 %v30_v16 }
  0x1e   :  { %188 = vmatprep.subr.mxu0 %v29_v17 }
  0x1f   :  { %189 = vmatpush3.msra.mxu0 %v29_v17 }
  0x20   :  { %190 = vmatprep.subr.mxu0 %v28_v18 }
  0x21   :  { %191 = vmatpush3.msra.mxu0 %v28_v18 }
  0x7d   :  { %v18_v21 = vpop.permute.xlu0 %17 }
  0x7e   :  { %vm22_vm0 = vcmp.eq.s32.totalorder %v15_v20, %v18_v21 }
  0x7f   :  { %192 = vmatprep.mubr.msk.f32.mxu0 %vm22_vm0, %v224_v22 }
  0x81   :  { %v21_v23 = vpop.permute.xlu0 %20 }
  0x82   :  { %vm23_vm1 = vcmp.eq.s32.totalorder %v15_v20, %v21_v23 }
  0x83   :  { %193 = vmatmul.mubr.msk.f32.vlgmr.msra.gmra.mxu0 %vm23_vm1, %v224_v22 }
 0x143   :  { %v194_v24 = vpop.f32.mrf.mxu0 }
 0x144   :  { %121 = vst.msk [vmem:[#allocation2 + $0x8] sm:$0xff] %vm119_vm2, %v194_v24 }
 0x145   :  { %v110_v25 = vpop.f32.mrf.mxu0 }
 0x146   :  { %120 = vst.msk [vmem:[#allocation2] sm:$0xff] %vm119_vm2, %v110_v25 }
 0x147   :  { %212 = shalt.err (!%p209_p4)
}
 0x148   :  { %s226_s18 = smov 128   ;;  %s227_s19 = smov 8  }
 0x149   :  { %133 = dma.vmem_to_hbm [thread:$0]  %s128_s17, 256, %s302_s2, [#allocation3], %s226_s18, %s226_s18, %s227_s19  }
 0x14a   :  { %221 = dma.done.wait [#allocation3], 256  }
 0x14b   :  { %222 = vsyncadd [#allocation3], 4294967040 }
 0x14c   :  { %137 = vsyncpa [#allocation3], 1 }

</bundles_post_ra>
